<compile_context>
chip_gen: v5e
topology: v5e:2x2
jax: 0.10.0
libtpu: 0.0.40
codegen_flags: <defaults>
</compile_context>

<pallas_src>
import jax
import jax.numpy as jnp
from jax.experimental import pallas as pl
from jax.experimental.pallas import tpu as pltpu

_LANE = 128
_SUBLANE = 8
_ROW_ALIGN = _SUBLANE * _LANE        # pad batch to a multiple of 1024 elements
_MAX_ROW_TILE = 2048                 # 2048 * 128 = 262144 batch elements per grid step
_MIN_PALLAS_BATCH = 1024             # below this, plain XLA is strictly faster
_VMEM_LIMIT_BYTES = 32 * 1024 * 1024


def _round_up(n, m):
    return ((n + m - 1) // m) * m


def linear_kernel(xt_ref, w_ref, b_ref, o_ref):
    """o[r, l] = sum_k w[k] * x[k, r, l] + b   (pure VPU, lane-dense output).

    xt_ref: (in_f, row_tile, 128) VMEM  -- batch on sublane x lane axes
    w_ref : (in_f,)               SMEM  -- float32 scalars
    b_ref : (1,)                  SMEM
    o_ref : (row_tile, 128)       VMEM  -- lane-dense output slab
    """
    in_f = xt_ref.shape[0]
    acc = xt_ref[0] * w_ref[0]
    for k in range(1, in_f):                        # static unroll (in_f = 3)
        acc = acc + xt_ref[k] * w_ref[k]
    o_ref[...] = (acc + b_ref[0]).astype(o_ref.dtype)


def linear_forward(x, weight, bias, *, row_tile=None, use_pallas=None):
    """y = x @ weight.T + bias, matching nn.Linear(3, 1).

    x:      (B, 3) float32
    weight: (1, 3) float32  (PyTorch layout: (out_features, in_features))
    bias:   (1,)   float32
    returns (B, 1) float32
    """
    B, in_f = x.shape
    out_f = weight.shape[0]

    if use_pallas is None:
        use_pallas = B >= _MIN_PALLAS_BATCH
    if not use_pallas:
        # Tiny batches: launch + layout plumbing dominate; fused XLA is faster.
        return (x @ weight.T + bias).astype(x.dtype)

    # Pad batch only to a (8*128)-multiple; never to a full tile.
    b_pad = _round_up(B, _ROW_ALIGN)
    rows = b_pad // _LANE                            # multiple of 8 by construction

    if row_tile is None:
        row_tile = min(_MAX_ROW_TILE, rows)
    row_tile = max(_SUBLANE, _round_up(row_tile, _SUBLANE))
    row_tile = min(row_tile, rows)

    # Pad + transpose + reshape: one fused copy under jit; the reshape is free.
    xt = jnp.pad(x, ((0, b_pad - B), (0, 0))).T.reshape(in_f, rows, _LANE)

    w_vec = weight.reshape(in_f).astype(jnp.float32)   # (3,)  -> SMEM (keep f32)
    b_vec = bias.reshape(out_f).astype(jnp.float32)    # (1,)  -> SMEM

    grid = (pl.cdiv(rows, row_tile),)                  # ragged last block is fine

    y2 = pl.pallas_call(
        linear_kernel,
        out_shape=jax.ShapeDtypeStruct((rows, _LANE), x.dtype),
        grid=grid,
        in_specs=[
            pl.BlockSpec((in_f, row_tile, _LANE), lambda i: (0, i, 0)),
            pl.BlockSpec(memory_space=pltpu.MemorySpace.SMEM),
            pl.BlockSpec(memory_space=pltpu.MemorySpace.SMEM),
        ],
        out_specs=pl.BlockSpec((row_tile, _LANE), lambda i: (i, 0)),
        compiler_params=pltpu.CompilerParams(
            dimension_semantics=("parallel",),
            vmem_limit_bytes=_VMEM_LIMIT_BYTES,
        ),
        cost_estimate=pl.CostEstimate(
            flops=2 * in_f * B,
            transcendentals=0,
            bytes_accessed=(in_f + out_f) * 4 * B,
        ),
    )(xt, w_vec, b_vec)

    # Padded lanes (zeros) and any ragged-block garbage are sliced off here.
    return y2.reshape(-1)[:B].reshape(B, out_f)


if __name__ == "__main__":
    key = jax.random.PRNGKey(0)
    kx, kw, kb, kx2 = jax.random.split(key, 4)

    in_features, out_features = 3, 1

    # Deterministic init matching nn.Linear's uniform(-1/sqrt(fan_in), 1/sqrt(fan_in)).
    bound = 1.0 / jnp.sqrt(jnp.float32(in_features))
    weight = jax.random.uniform(kw, (out_features, in_features),
                                jnp.float32, -bound, bound)
    bias = jax.random.uniform(kb, (out_features,), jnp.float32, -bound, bound)

    fwd = jax.jit(linear_forward, static_argnames=("row_tile", "use_pallas"))

    # 1) Small batch (module demo size), kernel path forced.
    B1 = 8
    x1 = jax.random.normal(kx, (B1, in_features), jnp.float32)
    y1 = fwd(x1, weight, bias, use_pallas=True)
    jax.block_until_ready(y1)
    y1_ref = x1 @ weight.T + bias
    assert y1.shape == (B1, out_features)
    assert jnp.allclose(y1, y1_ref, atol=1e-5, rtol=1e-5)

    # 2) Non-aligned batch with a small row tile: exercises multi-step grid
    #    (parallel axis) and the ragged last block handled via pl.cdiv.
    B2 = 4099
    x2 = jax.random.normal(kx2, (B2, in_features), jnp.float32)
    y2 = fwd(x2, weight, bias, use_pallas=True, row_tile=16)
    jax.block_until_ready(y2)
    y2_ref = x2 @ weight.T + bias
    assert y2.shape == (B2, out_features)
    assert jnp.allclose(y2, y2_ref, atol=1e-5, rtol=1e-5)

    print("KERNEL_OK")
</pallas_src>

<mosaic_0001>
module attributes {stable_mosaic.version = 11 : i64} {
  func.func @linear_kernel(%arg0: i32, %arg1: memref<3x8x128xf32, #tpu.memory_space<vmem>>, %arg2: memref<3xf32, #tpu.memory_space<smem>>, %arg3: memref<1xf32, #tpu.memory_space<smem>>, %arg4: memref<8x128xf32, #tpu.memory_space<vmem>>) attributes {dimension_semantics = [#tpu.dimension_semantics<parallel>], iteration_bounds = array<i64: 1>, scalar_prefetch = 0 : i64, scratch_operands = 0 : i64, tpu.core_type = #tpu.core_type<tc>, window_params = [{transform_indices = @transform_0, window_bounds = array<i64: 3, 8, 128>}, {transform_indices = @transform_1, window_bounds = array<i64: 3>}, {transform_indices = @transform_2, window_bounds = array<i64: 1>}, {transform_indices = @transform_3, window_bounds = array<i64: 8, 128>}]} {
    %c0 = arith.constant 0 : index
    %c0_0 = arith.constant 0 : index
    %c0_1 = arith.constant 0 : index
    %0 = vector.load %arg1[%c0, %c0_0, %c0_1] : memref<3x8x128xf32, #tpu.memory_space<vmem>>, vector<1x8x128xf32>
    %1 = vector.shape_cast %0 : vector<1x8x128xf32> to vector<8x128xf32>
    %c0_2 = arith.constant 0 : index
    %2 = memref.load %arg2[%c0_2] : memref<3xf32, #tpu.memory_space<smem>>
    %3 = vector.broadcast %2 : f32 to vector<8x128xf32>
    %4 = arith.mulf %1, %3 : vector<8x128xf32>
    %c1 = arith.constant 1 : index
    %c0_3 = arith.constant 0 : index
    %c0_4 = arith.constant 0 : index
    %5 = vector.load %arg1[%c1, %c0_3, %c0_4] : memref<3x8x128xf32, #tpu.memory_space<vmem>>, vector<1x8x128xf32>
    %6 = vector.shape_cast %5 : vector<1x8x128xf32> to vector<8x128xf32>
    %c1_5 = arith.constant 1 : index
    %7 = memref.load %arg2[%c1_5] : memref<3xf32, #tpu.memory_space<smem>>
    %8 = vector.broadcast %7 : f32 to vector<8x128xf32>
    %9 = arith.mulf %6, %8 : vector<8x128xf32>
    %10 = arith.addf %4, %9 : vector<8x128xf32>
    %c2 = arith.constant 2 : index
    %c0_6 = arith.constant 0 : index
    %c0_7 = arith.constant 0 : index
    %11 = vector.load %arg1[%c2, %c0_6, %c0_7] : memref<3x8x128xf32, #tpu.memory_space<vmem>>, vector<1x8x128xf32>
    %12 = vector.shape_cast %11 : vector<1x8x128xf32> to vector<8x128xf32>
    %c2_8 = arith.constant 2 : index
    %13 = memref.load %arg2[%c2_8] : memref<3xf32, #tpu.memory_space<smem>>
    %14 = vector.broadcast %13 : f32 to vector<8x128xf32>
    %15 = arith.mulf %12, %14 : vector<8x128xf32>
    %16 = arith.addf %10, %15 : vector<8x128xf32>
    %c0_9 = arith.constant 0 : index
    %17 = memref.load %arg3[%c0_9] : memref<1xf32, #tpu.memory_space<smem>>
    %18 = vector.broadcast %17 : f32 to vector<8x128xf32>
    %19 = arith.addf %16, %18 : vector<8x128xf32>
    %c0_10 = arith.constant 0 : index
    %c0_11 = arith.constant 0 : index
    %20 = vector.load %arg4[%c0_10, %c0_11] : memref<8x128xf32, #tpu.memory_space<vmem>>, vector<8x128xf32>
    tpu.vector_store %arg4[%c0_10, %c0_11], %19 {strides = array<i32>} : memref<8x128xf32, #tpu.memory_space<vmem>>, vector<8x128xf32>,
    return
  }
  func.func @transform_0(%arg0: i32) -> (i32, i32, i32) {
    %c0_i32 = arith.constant 0 : i32
    %c0_i32_0 = arith.constant 0 : i32
    %c0_i32_1 = arith.constant 0 : i32
    return %c0_i32, %arg0, %c0_i32_0 : i32, i32, i32
  }
  func.func @transform_1(%arg0: i32) -> i32 {
    %c0_i32 = arith.constant 0 : i32
    %c0_i32_0 = arith.constant 0 : i32
    return %c0_i32 : i32
  }
  func.func @transform_2(%arg0: i32) -> i32 {
    %c0_i32 = arith.constant 0 : i32
    %c0_i32_0 = arith.constant 0 : i32
    return %c0_i32 : i32
  }
  func.func @transform_3(%arg0: i32) -> (i32, i32) {
    %c0_i32 = arith.constant 0 : i32
    %c0_i32_0 = arith.constant 0 : i32
    return %arg0, %c0_i32 : i32, i32
  }
}

</mosaic_0001>

<bundles_post_ra>
// kernel: linear_forward.1
= control target key start
LH: loop header
LB: loop body
LE: loop exit
PB: predicated region body
PF: predicated region fallthrough
CT: control target
= control target key end

     0   :  { %9 = vsyncpa [#allocation4], 0  ;;  %s72_s15 = smov [#allocation3]   ;;  %s111_s0 = inlined_call_operand.vmem [shape: f32[3,8,128], index: 0, kind: input, shape index: {}]   ;;  %s112_s1 = inlined_call_operand.vmem [shape: f32[3], index: 1, kind: input, shape index: {}]   ;;  %s113_s2 = inlined_call_operand.<no memory space> [shape: f32[1], index: 2, kind: input, shape index: {}]   ;;  %s114_s3 = inlined_call_operand.vmem [shape: f32[8,128], index: 3, kind: output, shape index: {}]  }
   0x1   :  { %s17_s14 = sshll.u32 %s112_s1, 4  ;;  %s18_s14 = int_to_ptr.vmem [resolvable:$true] %s17_s14 }
   0x2   :  { %20 = dma.vmem_to_smem %s18_s14, 16, %s72_s15, [#allocation4]  }
   0x3   :  { %70 = dma.done.wait [#allocation4], 16  }
   0x4   :  { %71 = vsyncadd [#allocation4], 4294967280 }
   0x5   :  { %27 = sfence }
   0x6   :  { %s29_s16 = sld [smem:[#allocation3]]  ;;  %v28_v0 = vld [vmem:[%s111_s0] sm:$0xff]  ;;  %v53_v1 = vld [vmem:[%s111_s0 + $0x8] sm:$0xff]  ;;  %v55_v3 = vld [vmem:[%s111_s0 + $0x10] sm:$0xff]  ;;  %v45_v10 = vstv %s113_s2 }
   0x7   :  { %s54_s17 = sld [smem:[#allocation3 + $0x1]] }
   0x8   :  { %s56_s18 = sld [smem:[#allocation3 + $0x2]] }
   0xc   :  { %v30_v2 = vstv %s29_s16 }
   0xd   :  { %v31_v4 = vmul.f32 %v30_v2, %v28_v0  ;;  %v35_v5 = vstv %s54_s17 }
   0xe   :  { %v36_v6 = vmul.f32 %v53_v1, %v35_v5  ;;  %v41_v7 = vstv %s56_s18 }
   0xf   :  { %v42_v8 = vmul.f32 %v55_v3, %v41_v7 }
  0x10   :  { %v37_v9 = vadd.f32 %v36_v6, %v31_v4 }
  0x12   :  { %v43_v11 = vadd.f32 %v42_v8, %v37_v9 }
  0x14   :  { %v46_v12 = vadd.f32 %v45_v10, %v43_v11 }
  0x16   :  { %47 = vst [vmem:[%s114_s3] sm:$0xff] %v46_v12 }
  0x17   :  { %52 = vsyncpa [#allocation4], 1 }

</bundles_post_ra>
